<compile_context>
chip_gen: v7x
topology: tpu7x:2x2x1
jax: 0.10.0
libtpu: 0.0.40
codegen_flags: <defaults>
</compile_context>

<pallas_src>
import functools

import jax
import jax.numpy as jnp
from jax.experimental import pallas as pl
from jax.experimental.pallas import tpu as pltpu

LANE = 128   # TPU lane width (last-dim tile)
SUB = 16     # bf16 sublane packing (second-to-last dim tile)


def _round_up(n, m):
    return ((n + m - 1) // m) * m


def _sage2_kernel(adj0_ref, adj1_ref, x_ref, w1_ref, b1_ref, w2_ref, b2_ref,
                  out_ref):
    """Fused 2-layer SAGEConv('mean'); VMEM-resident, bf16 MXU feeds, f32 accum."""
    ones0 = x_ref.shape[1] - 1    # static lane index of the degree ("ones") column, layer 1
    ones1 = b1_ref.shape[1] - 1   # static lane index of the degree column, layer 2

    # ---------------- layer 1 ----------------
    adj0 = adj0_ref[...]                                        # bf16 (nd0p, ns0p), 0/1 exact
    x = x_ref[...]                                              # bf16 (ns0p, d_in_pad), last lane = 1
    agg0 = jnp.dot(adj0, x, preferred_element_type=jnp.float32)  # MXU; degree rides in lane `ones0`
    deg0 = jnp.maximum(agg0[:, ones0:ones0 + 1], 1.0)
    inv0 = pl.reciprocal(deg0, approx=True)                     # EUP slot, ~free
    h_neigh0 = (agg0 * inv0).astype(jnp.bfloat16)               # mean aggregation
    nd0 = adj0.shape[0]
    # fused self/neigh projection: [h_dst | h_neigh] @ [[W_self];[W_neigh]] + b
    hcat0 = jnp.concatenate([x[:nd0, :], h_neigh0], axis=1)
    h1 = jnp.dot(hcat0, w1_ref[...], preferred_element_type=jnp.float32) + b1_ref[...]
    # ReLU between layers; b1's spare lane is 1.0 so h1[:, ones1] == 1.0 -> layer-2 degrees.
    h1 = jnp.maximum(h1, 0.0).astype(jnp.bfloat16)

    # ---------------- layer 2 ---------------- (src nodes of block 1 == dst nodes of block 0)
    adj1 = adj1_ref[...]                                        # bf16 (nd1p, nd0p)
    agg1 = jnp.dot(adj1, h1, preferred_element_type=jnp.float32)
    deg1 = jnp.maximum(agg1[:, ones1:ones1 + 1], 1.0)
    inv1 = pl.reciprocal(deg1, approx=True)
    h_neigh1 = (agg1 * inv1).astype(jnp.bfloat16)
    nd1 = adj1.shape[0]
    hcat1 = jnp.concatenate([h1[:nd1, :], h_neigh1], axis=1)
    out = jnp.dot(hcat1, w2_ref[...], preferred_element_type=jnp.float32) + b2_ref[...]
    out_ref[...] = out.astype(out_ref.dtype)                    # lane-dense f32 store


def _full_spec(shape):
    """Whole-array single-block spec (no grid)."""
    return pl.BlockSpec(shape, lambda: (0,) * len(shape))


def _vmem_limit_bytes(arrays, out_nbytes):
    """Footprint-derived scoped-VMEM limit (v7x physical VMEM is 64 MiB)."""
    io_bytes = sum(int(a.size) * a.dtype.itemsize for a in arrays) + int(out_nbytes)
    # 4x headroom covers the f32 agg/hcat/h1 intermediates + compiler scratch.
    return int(min(64 * 1024 * 1024, max(4 * io_bytes + (2 << 20), 16 << 20)))


def _pack_layer(p, k_pad, n_pad, ones_bias_col=None):
    """Zero-pad fc_self/fc_neigh to (k_pad, n_pad) each (bf16) and stack along K.
    Bias is f32 (1, n_pad); optionally its spare `ones_bias_col` lane is set to 1.0
    so ReLU(bias) plants the degree column for the next layer."""
    w_self, w_neigh, bias = p["w_self"], p["w_neigh"], p["bias"]
    d_in, d_out = w_self.shape
    ws = jnp.zeros((k_pad, n_pad), jnp.bfloat16).at[:d_in, :d_out].set(
        w_self.astype(jnp.bfloat16))
    wn = jnp.zeros((k_pad, n_pad), jnp.bfloat16).at[:d_in, :d_out].set(
        w_neigh.astype(jnp.bfloat16))
    b = jnp.zeros((1, n_pad), jnp.float32).at[0, :d_out].set(bias)
    if ones_bias_col is not None:
        b = b.at[0, ones_bias_col].set(1.0)
    return jnp.concatenate([ws, wn], axis=0), b


def prepare_sage_params(params, in_size, hid_size):
    """One-time packing: pad feature dims to 128-multiples (always leaving one spare
    lane for the degree column), cast to bf16 and fuse self/neigh projections."""
    d_in_pad = _round_up(in_size + 1, LANE)
    d_hid_pad = _round_up(hid_size + 1, LANE)
    w1, b1 = _pack_layer(params[0], d_in_pad, d_hid_pad, ones_bias_col=d_hid_pad - 1)
    w2, b2 = _pack_layer(params[1], d_hid_pad, d_hid_pad, ones_bias_col=None)
    return dict(w1=w1, b1=b1, w2=w2, b2=b2)


def pad_graph_inputs(blocks, x):
    """One-time (data-pipeline) padding/casting of the MFG blocks and features:
    dst counts -> sublane multiples, adjacency lane dims -> 128-multiples, features
    -> padded lane dim with a trailing ones column; everything stored as bf16."""
    adj0, adj1 = blocks
    n_dst0, n_src0 = adj0.shape
    n_dst1, n_src1 = adj1.shape
    assert n_src1 == n_dst0, "DGL MFG: dst nodes of block 0 are src nodes of block 1"
    assert n_dst0 <= n_src0 and n_dst1 <= n_dst0, "DGL block invariant: dst = first src nodes"

    ns0p = _round_up(n_src0, LANE)              # lane dim of adj0 / rows of x
    nd0p = _round_up(n_dst0, LANE)              # lane dim of adj1 / rows of h1
    nd1p = _round_up(n_dst1, SUB)               # sublane-only (never a lane dim)
    in_size = x.shape[1]
    d_in_pad = _round_up(in_size + 1, LANE)     # +1 guarantees a spare "ones" lane

    adj0p = jnp.zeros((nd0p, ns0p), jnp.bfloat16).at[:n_dst0, :n_src0].set(
        adj0.astype(jnp.bfloat16))
    adj1p = jnp.zeros((nd1p, nd0p), jnp.bfloat16).at[:n_dst1, :n_dst0].set(
        adj1.astype(jnp.bfloat16))
    xp = jnp.zeros((ns0p, d_in_pad), jnp.bfloat16).at[:n_src0, :in_size].set(
        x.astype(jnp.bfloat16))
    xp = xp.at[:, d_in_pad - 1].set(jnp.bfloat16(1.0))   # ones column -> in-degree via MXU
    return adj0p, adj1p, xp


@jax.jit
def sage_forward(adj0, adj1, x, packed):
    """adj0 (nd0p, ns0p), adj1 (nd1p, nd0p) bf16 padded 0/1; x (ns0p, d_in_pad) bf16
    with a trailing ones lane. Returns the PADDED (nd1p, d_hid_pad) f32 output."""
    w1, b1, w2, b2 = packed["w1"], packed["b1"], packed["w2"], packed["b2"]
    n_dst1_p = adj1.shape[0]
    d_hid_pad = w1.shape[1]
    out_nbytes = n_dst1_p * d_hid_pad * 4
    operands = (adj0, adj1, x, w1, b1, w2, b2)
    return pl.pallas_call(
        _sage2_kernel,
        out_shape=jax.ShapeDtypeStruct((n_dst1_p, d_hid_pad), jnp.float32),
        in_specs=[_full_spec(a.shape) for a in operands],
        out_specs=_full_spec((n_dst1_p, d_hid_pad)),
        compiler_params=pltpu.CompilerParams(
            vmem_limit_bytes=_vmem_limit_bytes(operands, out_nbytes)),
    )(*operands)


def init_sage_params(key, in_size, hid_size):
    """Deterministic synthetic SAGEConv weights (fc_self, fc_neigh, bias) for 2 layers."""
    sizes = [(in_size, hid_size), (hid_size, hid_size)]
    params = []
    for i, (d_in, d_out) in enumerate(sizes):
        k1, k2, key = jax.random.split(jax.random.fold_in(key, i), 3)
        scale = 1.0 / jnp.sqrt(jnp.float32(d_in))
        params.append(dict(
            w_self=jax.random.normal(k1, (d_in, d_out), jnp.float32) * scale,
            w_neigh=jax.random.normal(k2, (d_in, d_out), jnp.float32) * scale,
            bias=jnp.zeros((d_out,), jnp.float32),
        ))
    return params


if __name__ == "__main__":
    key = jax.random.PRNGKey(0)

    in_size, hid_size = 16, 32
    n_src0, n_dst0 = 16, 8      # block 0: 16 src nodes -> 8 dst nodes
    n_src1, n_dst1 = 8, 4       # block 1:  8 src nodes -> 4 dst nodes

    kx, ka0, ka1, kp = jax.random.split(key, 4)
    x = jax.random.normal(kx, (n_src0, in_size), jnp.float32)

    # synthetic MFG blocks as dense 0/1 adjacencies (dst x src); self edge kept so
    # every dst node has at least one neighbor (DGL: dst = first src nodes)
    adj0 = jnp.maximum(jax.random.bernoulli(ka0, 0.4, (n_dst0, n_src0)).astype(jnp.float32),
                       jnp.eye(n_dst0, n_src0, dtype=jnp.float32))
    adj1 = jnp.maximum(jax.random.bernoulli(ka1, 0.4, (n_dst1, n_src1)).astype(jnp.float32),
                       jnp.eye(n_dst1, n_src1, dtype=jnp.float32))
    blocks = [adj0, adj1]

    params = init_sage_params(kp, in_size, hid_size)
    packed = prepare_sage_params(params, in_size, hid_size)          # one-time weight packing
    adj0p, adj1p, xp = pad_graph_inputs(blocks, x)                   # one-time data padding

    out_pad = jax.block_until_ready(sage_forward(adj0p, adj1p, xp, packed))
    out = out_pad[:n_dst1, :hid_size]                                # demo-only slice

    # pure-JAX f32 reference of the (unpadded, unfused) SAGEConv('mean') math
    h_ref = x
    for l, (adj, p) in enumerate(zip(blocks, params)):
        deg = jnp.maximum(jnp.sum(adj, axis=1, keepdims=True), 1.0)
        h_neigh = (adj @ h_ref) / deg
        o = h_ref[: adj.shape[0]] @ p["w_self"] + h_neigh @ p["w_neigh"] + p["bias"]
        h_ref = jnp.maximum(o, 0.0) if l != len(blocks) - 1 else o

    assert out.shape == (n_dst1, hid_size)
    # bf16 MXU operands + approx reciprocal => compare at bf16-level tolerance
    assert jnp.allclose(out, h_ref, atol=1e-1, rtol=5e-2)
    assert float(jnp.linalg.norm(out - h_ref) / jnp.linalg.norm(h_ref)) < 5e-2

    print("KERNEL_OK")
</pallas_src>

<mosaic_0001>
module attributes {stable_mosaic.version = 11 : i64} {
  func.func @_sage2_kernel(%arg0: memref<128x128xbf16, #tpu.memory_space<vmem>>, %arg1: memref<16x128xbf16, #tpu.memory_space<vmem>>, %arg2: memref<128x128xbf16, #tpu.memory_space<vmem>>, %arg3: memref<256x128xbf16, #tpu.memory_space<vmem>>, %arg4: memref<1x128xf32, #tpu.memory_space<vmem>>, %arg5: memref<256x128xbf16, #tpu.memory_space<vmem>>, %arg6: memref<1x128xf32, #tpu.memory_space<vmem>>, %arg7: memref<16x128xf32, #tpu.memory_space<vmem>>) attributes {dimension_semantics = [], scalar_prefetch = 0 : i64, scratch_operands = 0 : i64, tpu.core_type = #tpu.core_type<tc>} {
    %c0 = arith.constant 0 : index
    %c0_0 = arith.constant 0 : index
    %0 = vector.load %arg0[%c0, %c0_0] : memref<128x128xbf16, #tpu.memory_space<vmem>>, vector<128x128xbf16>
    %c0_1 = arith.constant 0 : index
    %c0_2 = arith.constant 0 : index
    %1 = vector.load %arg2[%c0_1, %c0_2] : memref<128x128xbf16, #tpu.memory_space<vmem>>, vector<128x128xbf16>
    %cst = arith.constant dense<0.000000e+00> : vector<128x128xf32>
    %2 = tpu.matmul %0, %1, %cst {dimension_numbers = #tpu.dot_dimension_numbers<[1], [0], [0], [1], [0, 0, 1, 1], [], []>} : vector<128x128xbf16>, vector<128x128xbf16>, vector<128x128xf32> -> vector<128x128xf32>
    %3 = vector.extract_strided_slice %2 {offsets = [0, 127], sizes = [128, 1], strides = [1, 1]} : vector<128x128xf32> to vector<128x1xf32>
    %cst_3 = arith.constant 1.000000e+00 : f32
    %4 = vector.broadcast %cst_3 : f32 to vector<128x1xf32>
    %5 = arith.maximumf %3, %4 : vector<128x1xf32>
    %6 = tpu.reciprocal %5 {approx = true} : vector<128x1xf32> -> vector<128x1xf32>
    %7 = vector.broadcast %6 : vector<128x1xf32> to vector<128x128xf32>
    %8 = arith.mulf %2, %7 : vector<128x128xf32>
    %9 = arith.truncf %8 : vector<128x128xf32> to vector<128x128xbf16>
    %10 = tpu.concatenate %1, %9 in 1 : vector<128x128xbf16>, vector<128x128xbf16> -> vector<128x256xbf16>
    %c0_4 = arith.constant 0 : index
    %c0_5 = arith.constant 0 : index
    %11 = vector.load %arg3[%c0_4, %c0_5] : memref<256x128xbf16, #tpu.memory_space<vmem>>, vector<256x128xbf16>
    %cst_6 = arith.constant dense<0.000000e+00> : vector<128x128xf32>
    %12 = tpu.matmul %10, %11, %cst_6 {dimension_numbers = #tpu.dot_dimension_numbers<[1], [0], [0], [1], [0, 0, 1, 1], [], []>} : vector<128x256xbf16>, vector<256x128xbf16>, vector<128x128xf32> -> vector<128x128xf32>
    %c0_7 = arith.constant 0 : index
    %c0_8 = arith.constant 0 : index
    %13 = vector.load %arg4[%c0_7, %c0_8] : memref<1x128xf32, #tpu.memory_space<vmem>>, vector<1x128xf32>
    %14 = vector.broadcast %13 : vector<1x128xf32> to vector<128x128xf32>
    %15 = arith.addf %12, %14 : vector<128x128xf32>
    %cst_9 = arith.constant 0.000000e+00 : f32
    %16 = vector.broadcast %cst_9 : f32 to vector<128x128xf32>
    %17 = arith.maximumf %15, %16 : vector<128x128xf32>
    %18 = arith.truncf %17 : vector<128x128xf32> to vector<128x128xbf16>
    %c0_10 = arith.constant 0 : index
    %c0_11 = arith.constant 0 : index
    %19 = vector.load %arg1[%c0_10, %c0_11] : memref<16x128xbf16, #tpu.memory_space<vmem>>, vector<16x128xbf16>
    %cst_12 = arith.constant dense<0.000000e+00> : vector<16x128xf32>
    %20 = tpu.matmul %19, %18, %cst_12 {dimension_numbers = #tpu.dot_dimension_numbers<[1], [0], [0], [1], [0, 0, 1, 1], [], []>} : vector<16x128xbf16>, vector<128x128xbf16>, vector<16x128xf32> -> vector<16x128xf32>
    %21 = vector.extract_strided_slice %20 {offsets = [0, 127], sizes = [16, 1], strides = [1, 1]} : vector<16x128xf32> to vector<16x1xf32>
    %cst_13 = arith.constant 1.000000e+00 : f32
    %22 = vector.broadcast %cst_13 : f32 to vector<16x1xf32>
    %23 = arith.maximumf %21, %22 : vector<16x1xf32>
    %24 = tpu.reciprocal %23 {approx = true} : vector<16x1xf32> -> vector<16x1xf32>
    %25 = vector.broadcast %24 : vector<16x1xf32> to vector<16x128xf32>
    %26 = arith.mulf %20, %25 : vector<16x128xf32>
    %27 = arith.truncf %26 : vector<16x128xf32> to vector<16x128xbf16>
    %28 = vector.extract_strided_slice %18 {offsets = [0, 0], sizes = [16, 128], strides = [1, 1]} : vector<128x128xbf16> to vector<16x128xbf16>
    %29 = tpu.concatenate %28, %27 in 1 : vector<16x128xbf16>, vector<16x128xbf16> -> vector<16x256xbf16>
    %c0_14 = arith.constant 0 : index
    %c0_15 = arith.constant 0 : index
    %30 = vector.load %arg5[%c0_14, %c0_15] : memref<256x128xbf16, #tpu.memory_space<vmem>>, vector<256x128xbf16>
    %cst_16 = arith.constant dense<0.000000e+00> : vector<16x128xf32>
    %31 = tpu.matmul %29, %30, %cst_16 {dimension_numbers = #tpu.dot_dimension_numbers<[1], [0], [0], [1], [0, 0, 1, 1], [], []>} : vector<16x256xbf16>, vector<256x128xbf16>, vector<16x128xf32> -> vector<16x128xf32>
    %c0_17 = arith.constant 0 : index
    %c0_18 = arith.constant 0 : index
    %32 = vector.load %arg6[%c0_17, %c0_18] : memref<1x128xf32, #tpu.memory_space<vmem>>, vector<1x128xf32>
    %33 = vector.broadcast %32 : vector<1x128xf32> to vector<16x128xf32>
    %34 = arith.addf %31, %33 : vector<16x128xf32>
    %c0_19 = arith.constant 0 : index
    %c0_20 = arith.constant 0 : index
    %35 = vector.load %arg7[%c0_19, %c0_20] : memref<16x128xf32, #tpu.memory_space<vmem>>, vector<16x128xf32>
    tpu.vector_store %arg7[%c0_19, %c0_20], %34 {strides = array<i32>} : memref<16x128xf32, #tpu.memory_space<vmem>>, vector<16x128xf32>,
    return
  }
}

</mosaic_0001>

<bundles_post_ra>
// kernel: sage_forward.1
= control target key start
LH: loop header
LB: loop body
LE: loop exit
PB: predicated region body
PF: predicated region fallthrough
CT: control target
= control target key end

     0   :  { %12 = vsyncpa [#allocation3], 0  ;;  %s1725_s0 = inlined_call_operand.hbm [shape: bf16[128,128], index: 0, kind: input, shape index: {}]   ;;  %s1726_s1 = inlined_call_operand.hbm [shape: bf16[16,128], index: 1, kind: input, shape index: {}]   ;;  %s1727_s2 = inlined_call_operand.hbm [shape: bf16[128,128], index: 2, kind: input, shape index: {}]   ;;  %s1728_s3 = inlined_call_operand.hbm [shape: bf16[256,128], index: 3, kind: input, shape index: {}]   ;;  %s1729_s4 = inlined_call_operand.vmem [shape: f32[1,128], index: 4, kind: input, shape index: {}]   ;;  %s1730_s5 = inlined_call_operand.hbm [shape: bf16[256,128], index: 5, kind: input, shape index: {}]   ;;  %s1731_s6 = inlined_call_operand.vmem [shape: f32[1,128], index: 6, kind: input, shape index: {}]   ;;  %s1732_s7 = inlined_call_operand.hbm [shape: f32[16,128], index: 7, kind: output, shape index: {}]  }
   0x1   :  { %13 = vsyncpa [#allocation6], 0 }
   0x2   :  { %14 = vsyncpa [#allocation9], 0 }
   0x3   :  { %15 = vsyncpa [#allocation4], 0  ;;  %s1430_s24 = smov [#allocation5]   ;;  %s1431_s26 = smov [#allocation8]  }
   0x4   :  { %s33_s25 = sshll.u32 %s1430_s24, 4  ;;  %s57_s27 = sshll.u32 %s1431_s26, 4  ;;  %s34_s25 = int_to_ptr.vmem [resolvable:$true] %s33_s25  ;;  %s1483_s27 = int_to_ptr.vmem [resolvable:$true] %s57_s27 }
   0x5   :  { %s1290_s30 = scalar_lea.hbm %s1726_s1, 128 }
   0x6   :  { %p1291_p0 = scmp.ne.s32.totalorder %s1726_s1, %s1290_s30  ;;  %p1294_p1 = scmp.lt.u32.totalorder %s1290_s30, %s1726_s1 }
   0x8   :  { %p1296_p2 = pnand %p1294_p1, %p1291_p0 }
   0xa   :  { %1299 = shalt.err (!%p1296_p2)
}
   0xb   :  { %s1300_s12 = scalar_lea.vmem %s34_s25, 128  ;;  %p1305_p4 = scmp.lt.s32.totalorder %s34_s25, %s34_s25 }
   0xc   :  { %p1301_p3 = scmp.ne.s32.totalorder %s34_s25, %s1300_s12  ;;  %p1306_p5 = scmp.lt.s32.totalorder %s1300_s12, %s1300_s12 }
   0xe   :  { %p1307_p6 = por %p1306_p5, %p1305_p4 }
  0x10   :  { %p1308_p7 = pnand %p1307_p6, %p1301_p3 }
  0x12   :  { %1311 = shalt.err (!%p1308_p7)
}
  0x13   :  { %s1432_s13 = smov 64   ;;  %s1433_s14 = smov 4  }
  0x14   :  { %39 = dma.hbm_to_vmem [thread:$0]  %s1726_s1, 128, %s34_s25, [#allocation6], %s1432_s13, %s1432_s13, %s1433_s14  }
  0x15   :  { %s1312_s19 = scalar_lea.hbm %s1728_s3, 2048 }
  0x16   :  { %p1313_p8 = scmp.ne.s32.totalorder %s1728_s3, %s1312_s19  ;;  %p1316_p9 = scmp.lt.u32.totalorder %s1312_s19, %s1728_s3 }
  0x18   :  { %p1318_p10 = pnand %p1316_p9, %p1313_p8 }
  0x1a   :  { %1321 = shalt.err (!%p1318_p10)
}
  0x1b   :  { %s1322_s24 = scalar_lea.vmem %s1483_s27, 2048  ;;  %p1327_p12 = scmp.lt.s32.totalorder %s1483_s27, %s1483_s27 }
  0x1c   :  { %p1323_p11 = scmp.ne.s32.totalorder %s1483_s27, %s1322_s24  ;;  %p1328_p13 = scmp.lt.s32.totalorder %s1322_s24, %s1322_s24 }
  0x1e   :  { %p1329_p0 = por %p1328_p13, %p1327_p12 }
  0x20   :  { %p1330_p1 = pnand %p1329_p0, %p1323_p11 }
  0x22   :  { %1333 = shalt.err (!%p1330_p1)
}
  0x23   :  { %63 = dma.hbm_to_vmem [thread:$0]  %s1728_s3, 2048, %s1483_s27, [#allocation9], %s1432_s13, %s1432_s13, %s1433_s14  }
  0x24   :  { %s1434_s26 = smov [#allocation2]   ;;  %s1435_s29 = smov [#allocation7]  }
  0x25   :  { %s21_s28 = sshll.u32 %s1434_s26, 4  ;;  %s45_s30 = sshll.u32 %s1435_s29, 4  ;;  %s22_s28 = int_to_ptr.vmem [resolvable:$true] %s21_s28  ;;  %s1520_s30 = int_to_ptr.vmem [resolvable:$true] %s45_s30 }
  0x26   :  { %s1334_s10 = scalar_lea.hbm %s1725_s0, 1024 }
  0x27   :  { %p1335_p2 = scmp.ne.s32.totalorder %s1725_s0, %s1334_s10  ;;  %p1338_p3 = scmp.lt.u32.totalorder %s1334_s10, %s1725_s0 }
  0x29   :  { %p1340_p4 = pnand %p1338_p3, %p1335_p2 }
  0x2b   :  { %1343 = shalt.err (!%p1340_p4)
}
  0x2c   :  { %s1344_s3 = scalar_lea.vmem %s22_s28, 1024  ;;  %p1349_p6 = scmp.lt.s32.totalorder %s22_s28, %s22_s28 }
  0x2d   :  { %p1345_p5 = scmp.ne.s32.totalorder %s22_s28, %s1344_s3  ;;  %p1350_p7 = scmp.lt.s32.totalorder %s1344_s3, %s1344_s3 }
  0x2f   :  { %p1351_p8 = por %p1350_p7, %p1349_p6 }
  0x31   :  { %p1352_p9 = pnand %p1351_p8, %p1345_p5 }
  0x33   :  { %1355 = shalt.err (!%p1352_p9)
}
  0x34   :  { %27 = dma.hbm_to_vmem [thread:$0]  %s1725_s0, 1024, %s22_s28, [#allocation3], %s1432_s13, %s1432_s13, %s1433_s14  }
  0x35   :  { %s1356_s20 = scalar_lea.hbm %s1727_s2, 1024 }
  0x36   :  { %p1357_p10 = scmp.ne.s32.totalorder %s1727_s2, %s1356_s20  ;;  %p1360_p11 = scmp.lt.u32.totalorder %s1356_s20, %s1727_s2 }
  0x38   :  { %p1362_p12 = pnand %p1360_p11, %p1357_p10 }
  0x3a   :  { %1365 = shalt.err (!%p1362_p12)
}
  0x3b   :  { %s1366_s1 = scalar_lea.vmem %s1520_s30, 1024  ;;  %p1371_p0 = scmp.lt.s32.totalorder %s1520_s30, %s1520_s30 }
  0x3c   :  { %p1367_p13 = scmp.ne.s32.totalorder %s1520_s30, %s1366_s1  ;;  %p1372_p1 = scmp.lt.s32.totalorder %s1366_s1, %s1366_s1 }
  0x3e   :  { %p1373_p2 = por %p1372_p1, %p1371_p0 }
  0x40   :  { %p1374_p3 = pnand %p1373_p2, %p1367_p13 }
  0x42   :  { %1377 = shalt.err (!%p1374_p3)
}
  0x43   :  { %51 = dma.hbm_to_vmem [thread:$0]  %s1727_s2, 1024, %s1520_s30, [#allocation6], %s1432_s13, %s1432_s13, %s1433_s14  }
  0x44   :  { %s1436_s26 = smov [#allocation10]   ;;  %s1378_s9 = scalar_lea.hbm %s1730_s5, 2048 }
  0x45   :  { %s71_s28 = sshll.u32 %s1436_s26, 4  ;;  %p1379_p4 = scmp.ne.s32.totalorder %s1730_s5, %s1378_s9  ;;  %s72_s28 = int_to_ptr.vmem [resolvable:$true] %s71_s28 }
  0x46   :  { %p1382_p5 = scmp.lt.u32.totalorder %s1378_s9, %s1730_s5 }
  0x48   :  { %p1384_p6 = pnand %p1382_p5, %p1379_p4 }
  0x4a   :  { %1387 = shalt.err (!%p1384_p6)
}
  0x4b   :  { %s1388_s16 = scalar_lea.vmem %s72_s28, 2048  ;;  %p1393_p8 = scmp.lt.s32.totalorder %s72_s28, %s72_s28 }
  0x4c   :  { %p1389_p7 = scmp.ne.s32.totalorder %s72_s28, %s1388_s16  ;;  %p1394_p9 = scmp.lt.s32.totalorder %s1388_s16, %s1388_s16 }
  0x4e   :  { %p1395_p10 = por %p1394_p9, %p1393_p8 }
  0x50   :  { %p1396_p11 = pnand %p1395_p10, %p1389_p7 }
  0x52   :  { %1399 = shalt.err (!%p1396_p11)
}
  0x53   :  { %77 = dma.hbm_to_vmem [thread:$0]  %s1730_s5, 2048, %s72_s28, [#allocation9], %s1432_s13, %s1432_s13, %s1433_s14  }
  0x54   :  { %1422 = dma.done.wait [#allocation3], 1024  }
  0x55   :  { %1423 = vsyncadd [#allocation3], 4294966272 }
  0x56   :  { %1424 = dma.done.wait [#allocation6], 1152  }
  0x57   :  { %1425 = vsyncadd [#allocation6], 4294966144 }
  0x58   :  { %1426 = dma.done.wait [#allocation9], 4096  }
  0x59   :  { %1427 = vsyncadd [#allocation9], 4294963200  ;;  %v1572_v0 = vld [vmem:[#allocation7] sm:$0xff]   ;;  %v1574_v1 = vld [vmem:[#allocation7 + $0x8] sm:$0xff]   ;;  %v1437_v16 = vmov 127   ;;  %vm1439_vm0 = vmmov 0  }
  0x5a   :  { %1138 = vmatprep.subr.bf16.mxu0 %v1572_v0  ;;  %v1579_v2 = vld [vmem:[#allocation7 + $0x10] sm:$0xff]   ;;  %v1582_v3 = vld [vmem:[#allocation7 + $0x18] sm:$0xff]   ;;  %v1587_v5 = vld [vmem:[#allocation7 + $0x20] sm:$0xff]   ;;  %1204 = vset.pattern.permute.xlu1 %v1437_v16  ;;  %s1440_s3 = smov [#allocation11]  }
  0x5b   :  { %1139 = vmatpush3.bf16.msra.mxu0 %v1572_v0  ;;  %v1213_v4 = vld [vmem:[#allocation2] sm:$0xff]   ;;  %v1590_v6 = vld [vmem:[#allocation7 + $0x28] sm:$0xff]   ;;  %v1593_v7 = vld [vmem:[#allocation7 + $0x30] sm:$0xff]   ;;  %1203 = vset.pattern.permute.xlu0 %v1437_v16  ;;  %s962_s27 = sshll.u32 %s1440_s3, 4  ;;  %s963_s27 = int_to_ptr.vmem [resolvable:$true] %s962_s27 }
  0x5c   :  { %1140 = vmatprep.subr.bf16.mxu0 %v1574_v1  ;;  %1154 = vmatprep.mubr.bf16.mxu0 %v1213_v4  ;;  %v1597_v8 = vld [vmem:[#allocation7 + $0x38] sm:$0xff]   ;;  %v1214_v9 = vld [vmem:[#allocation2 + $0x8] sm:$0xff]   ;;  %v1215_v10 = vld [vmem:[#allocation2 + $0x10] sm:$0xff]   ;;  %s1400_s17 = scalar_lea.vmem %s963_s27, 256  ;;  %p1405_p13 = scmp.lt.s32.totalorder %s963_s27, %s963_s27 }
  0x5d   :  { %v1216_v11 = vld [vmem:[#allocation2 + $0x18] sm:$0xff]   ;;  %v1217_v12 = vld [vmem:[#allocation2 + $0x20] sm:$0xff]   ;;  %v1218_v13 = vld [vmem:[#allocation2 + $0x28] sm:$0xff]   ;;  %p1401_p12 = scmp.ne.s32.totalorder %s963_s27, %s1400_s17  ;;  %p1406_p0 = scmp.lt.s32.totalorder %s1400_s17, %s1400_s17 }
  0x5e   :  { %v1219_v14 = vld [vmem:[#allocation2 + $0x30] sm:$0xff]   ;;  %v1220_v15 = vld [vmem:[#allocation2 + $0x38] sm:$0xff]   ;;  %v1221_v17 = vld [vmem:[#allocation8 + $0x40] sm:$0xff]  }
  0x5f   :  { %1141 = vmatpush3.bf16.msra.mxu0 %v1574_v1  ;;  %v1222_v18 = vld [vmem:[#allocation8] sm:$0xff]   ;;  %v1223_v19 = vld [vmem:[#allocation8 + $0x48] sm:$0xff]   ;;  %1043 = vmatprep.subr.bf16.mxu1 %v1221_v17  ;;  %v1225_v21 = vld [vmem:[#allocation8 + $0x50] sm:$0xff]   ;;  %p1407_p1 = por %p1406_p0, %p1405_p13 }
  0x60   :  { %1142 = vmatprep.subr.bf16.mxu0 %v1579_v2  ;;  %1044 = vmatpush3.bf16.msra.mxu1 %v1222_v18  ;;  %v1224_v20 = vld [vmem:[#allocation8 + $0x8] sm:$0xff]   ;;  %v1226_v22 = vld [vmem:[#allocation8 + $0x10] sm:$0xff]   ;;  %v1227_v23 = vld [vmem:[#allocation8 + $0x58] sm:$0xff]  }
  0x61   :  { %1045 = vmatprep.subr.bf16.mxu1 %v1223_v19  ;;  %v1228_v24 = vld [vmem:[#allocation8 + $0x18] sm:$0xff]   ;;  %v1229_v25 = vld [vmem:[#allocation8 + $0x60] sm:$0xff]   ;;  %v1231_v27 = vld [vmem:[#allocation8 + $0x68] sm:$0xff]   ;;  %p1408_p2 = pnand %p1407_p1, %p1401_p12 }
  0x62   :  { %v1230_v26 = vld [vmem:[#allocation8 + $0x20] sm:$0xff]   ;;  %v1232_v28 = vld [vmem:[#allocation8 + $0x28] sm:$0xff]   ;;  %v1233_v47 = vld [vmem:[#allocation8 + $0x70] sm:$0xff]  }
  0x63   :  { %1143 = vmatpush3.bf16.msra.mxu0 %v1579_v2  ;;  %v1234_v48 = vld [vmem:[#allocation8 + $0x30] sm:$0xff]   ;;  %v1235_v56 = vld [vmem:[#allocation8 + $0x78] sm:$0xff]  }
  0x64   :  { %1144 = vmatprep.subr.bf16.mxu0 %v1582_v3  ;;  %1046 = vmatpush3.bf16.msra.mxu1 %v1224_v20  ;;  %v1236_v58 = vld [vmem:[#allocation8 + $0x38] sm:$0xff]  }
  0x65   :  { %1047 = vmatprep.subr.bf16.mxu1 %v1225_v21 }
  0x67   :  { %1145 = vmatpush3.bf16.msra.mxu0 %v1582_v3 }
  0x68   :  { %1146 = vmatprep.subr.bf16.mxu0 %v1587_v5  ;;  %1048 = vmatpush3.bf16.msra.mxu1 %v1226_v22 }
  0x69   :  { %1049 = vmatprep.subr.bf16.mxu1 %v1227_v23 }
  0x6b   :  { %1147 = vmatpush3.bf16.msra.mxu0 %v1587_v5 }
  0x6c   :  { %1148 = vmatprep.subr.bf16.mxu0 %v1590_v6  ;;  %1050 = vmatpush3.bf16.msra.mxu1 %v1228_v24 }
  0x6d   :  { %1051 = vmatprep.subr.bf16.mxu1 %v1229_v25 }
  0x6f   :  { %1149 = vmatpush3.bf16.msra.mxu0 %v1590_v6 }
  0x70   :  { %1150 = vmatprep.subr.bf16.mxu0 %v1593_v7  ;;  %1052 = vmatpush3.bf16.msra.mxu1 %v1230_v26 }
  0x71   :  { %1053 = vmatprep.subr.bf16.mxu1 %v1231_v27 }
  0x73   :  { %1151 = vmatpush3.bf16.msra.mxu0 %v1593_v7 }
  0x74   :  { %1152 = vmatprep.subr.bf16.mxu0 %v1597_v8  ;;  %1054 = vmatpush3.bf16.msra.mxu1 %v1232_v28 }
  0x75   :  { %1055 = vmatprep.subr.bf16.mxu1 %v1233_v47 }
  0x77   :  { %1153 = vmatpush3.bf16.msra.mxu0 %v1597_v8 }
  0x78   :  { %1056 = vmatpush3.bf16.msra.mxu1 %v1234_v48 }
  0x79   :  { %1057 = vmatprep.subr.bf16.mxu1 %v1235_v56 }
  0x7a   :  { %1155 = vmatmul.mubr.bf16.vlgmr.msra.gmra.mrb[0].mxu0 %v1214_v9 }
  0x7b   :  { %1158 = vmatprep.mubr.bf16.mxu0 %v1215_v10 }
  0x7c   :  { %1058 = vmatpush3.bf16.msra.mxu1 %v1236_v58 }
  0x82   :  { %1159 = vmatmul.mubr.bf16.gmra.mrb[4].mxu0 %v1216_v11 }
  0x83   :  { %1162 = vmatprep.mubr.bf16.mxu0 %v1217_v12 }
  0x8a   :  { %1163 = vmatmul.mubr.bf16.gmra.mrb[8].mxu0 %v1218_v13 }
  0x8b   :  { %1166 = vmatprep.mubr.bf16.mxu0 %v1219_v14 }
  0x92   :  { %1167 = vmatmul.mubr.bf16.gmra.mrb[12].mxu0 %v1220_v15 }
 0x14d   :  { %v1604_v29 = vpop.f32.mrb[0].mxu0 }
 0x14e   :  { %v323_v30 = vmax.f32 %v1604_v29, 1.0  ;;  %v1607_v31 = vpop.f32.mrb[1].mxu0 }
 0x14f   :  { %v321_v32 = vmax.f32 %v1607_v31, 1.0  ;;  %v1610_v33 = vpop.f32.mrb[2].mxu0 }
 0x150   :  { %1254 = vrcp.f32 %v323_v30  ;;  %v324_v34 = vmax.f32 %v1610_v33, 1.0  ;;  %v1613_v35 = vpop.f32.mrb[3].mxu0 }
 0x151   :  { %1256 = vrcp.f32 %v321_v32  ;;  %v322_v36 = vmax.f32 %v1613_v35, 1.0 }
 0x152   :  { %1258 = vrcp.f32 %v324_v34 }
 0x153   :  { %1260 = vrcp.f32 %v322_v36 }
 0x155   :  { %v1616_v37 = vpop.f32.mrb[4].mxu0 }
 0x156   :  { %v327_v38 = vmax.f32 %v1616_v37, 1.0  ;;  %v1619_v39 = vpop.f32.mrb[5].mxu0 }
 0x157   :  { %v325_v40 = vmax.f32 %v1619_v39, 1.0  ;;  %v1622_v41 = vpop.f32.mrb[6].mxu0 }
 0x158   :  { %v1624_v42 = vpop.f32.mrb[7].mxu0  ;;  %v328_v43 = vmax.f32 %v1622_v41, 1.0 }
 0x159   :  { %1262 = vrcp.f32 %v325_v40  ;;  %v326_v44 = vmax.f32 %v1624_v42, 1.0 }
 0x15a   :  { %v1255_v45 = vpop.eup %1254  ;;  %1264 = vrcp.f32 %v327_v38 }
 0x15b   :  { %v1257_v46 = vpop.eup %1256  ;;  %1266 = vrcp.f32 %v326_v44  ;;  %365 = vperm.xlu1 %1204, %v1255_v45  }
 0x15c   :  { %355 = vperm.xlu0 %1203, %v1257_v46   ;;  %1268 = vrcp.f32 %v328_v43  ;;  %v1259_v50 = vpop.eup %1258 }
 0x15d   :  { %v1628_v49 = vpop.f32.mrb[8].mxu0  ;;  %v1261_v53 = vpop.eup %1260 }
 0x15e   :  { %v331_v51 = vmax.f32 %v1628_v49, 1.0  ;;  %v1631_v52 = vpop.f32.mrb[9].mxu0 }
 0x15f   :  { %v329_v54 = vmax.f32 %v1631_v52, 1.0  ;;  %370 = vperm.xlu1 %1204, %v1259_v50   ;;  %v1634_v55 = vpop.f32.mrb[10].mxu0 }
 0x160   :  { %360 = vperm.xlu0 %1203, %v1261_v53   ;;  %v1636_v57 = vpop.f32.mrb[11].mxu0  ;;  %v332_v59 = vmax.f32 %v1634_v55, 1.0 }
 0x161   :  { %1270 = vrcp.f32 %v329_v54  ;;  %v330_v60 = vmax.f32 %v1636_v57, 1.0 }
 0x162   :  { %1272 = vrcp.f32 %v331_v51 }
 0x163   :  { %v1263_v61 = vpop.eup %1262  ;;  %1274 = vrcp.f32 %v330_v60 }
 0x164   :  { %v1265_v62 = vpop.eup %1264  ;;  %375 = vperm.xlu0 %1203, %v1263_v61   ;;  %1276 = vrcp.f32 %v332_v59 }
 0x165   :  { %v1267_v63 = vpop.eup %1266  ;;  %v1640_v4 = vpop.f32.mrb[12].mxu0 }
 0x166   :  { %v335_v9 = vmax.f32 %v1640_v4, 1.0  ;;  %380 = vperm.xlu1 %1204, %v1267_v63   ;;  %v1643_v10 = vpop.f32.mrb[13].mxu0  ;;  %v1269_v11 = vpop.eup %1268 }
 0x167   :  { %v333_v12 = vmax.f32 %v1643_v10, 1.0  ;;  %v1646_v13 = vpop.f32.mrb[14].mxu0 }
 0x168   :  { %385 = vperm.xlu0 %1203, %v1265_v62   ;;  %v1648_v14 = vpop.f32.mrb[15].mxu0  ;;  %v336_v15 = vmax.f32 %v1646_v13, 1.0 }
 0x169   :  { %1278 = vrcp.f32 %v333_v12  ;;  %v334_v16 = vmax.f32 %v1648_v14, 1.0 }
 0x16a   :  { %1280 = vrcp.f32 %v335_v9  ;;  %390 = vperm.xlu1 %1204, %v1269_v11  }
 0x16b   :  { %v1271_v17 = vpop.eup %1270  ;;  %1282 = vrcp.f32 %v334_v16 }
 0x16c   :  { %v1273_v18 = vpop.eup %1272  ;;  %395 = vperm.xlu0 %1203, %v1271_v17   ;;  %1284 = vrcp.f32 %v336_v15 }
 0x16d   :  { %v1275_v19 = vpop.eup %1274 }
 0x16e   :  { %400 = vperm.xlu1 %1204, %v1275_v19   ;;  %v1277_v20 = vpop.eup %1276 }
 0x170   :  { %405 = vperm.xlu0 %1203, %v1273_v18  }
 0x172   :  { %410 = vperm.xlu1 %1204, %v1277_v20  }
 0x173   :  { %v1279_v21 = vpop.eup %1278 }
 0x174   :  { %v1281_v22 = vpop.eup %1280  ;;  %415 = vperm.xlu0 %1203, %v1279_v21  }
 0x175   :  { %v1283_v23 = vpop.eup %1282 }
 0x176   :  { %420 = vperm.xlu1 %1204, %v1283_v23   ;;  %v1285_v24 = vpop.eup %1284 }
 0x178   :  { %425 = vperm.xlu0 %1203, %v1281_v22  }
 0x17a   :  { %430 = vperm.xlu1 %1204, %v1285_v24  }
 0x1da   :  { %v366_v25 = vpop.permute.xlu1 %365 }
 0x1db   :  { %v356_v26 = vpop.permute.xlu0 %355  ;;  %v435_v28 = vmul.f32 %v1604_v29, %v366_v25 }
 0x1dc   :  { %v433_v34 = vmul.f32 %v356_v26, %v1607_v31 }
 0x1de   :  { %v371_v27 = vpop.permute.xlu1 %370 }
 0x1df   :  { %v436_v30 = vmul.f32 %v1610_v33, %v371_v27  ;;  %v361_v32 = vpop.permute.xlu0 %360 }
 0x1e0   :  { %v434_v36 = vmul.f32 %v361_v32, %v1613_v35 }
 0x1e1   :  { %v450_v38 = vpack.c.bf16 %v436_v30, %v435_v28 }
 0x1e2   :  { %v449_v40 = vpack.c.bf16 %v434_v36, %v433_v34 }
 0x1e3   :  { %v376_v43 = vpop.permute.xlu0 %375 }
 0x1e4   :  { %624 = vmatprep.mubr.bf16.mxu1 %v449_v40  ;;  %v437_v45 = vmul.f32 %v376_v43, %v1619_v39 }
 0x1e5   :  { %625 = vmatmul.mubr.bf16.vlgmr.msra.gmra.mrb[0].mxu1 %v1572_v0  ;;  %v381_v44 = vpop.permute.xlu1 %380 }
 0x1e6   :  { %v438_v46 = vmul.f32 %v381_v44, %v1624_v42  ;;  %632 = vmatprep.mubr.bf16.mxu1 %v450_v38 }
 0x1e7   :  { %v386_v29 = vpop.permute.xlu0 %385 }
 0x1e8   :  { %v451_v47 = vpack.c.bf16 %v438_v46, %v437_v45  ;;  %v439_v48 = vmul.f32 %v1616_v37, %v386_v29 }
 0x1e9   :  { %v391_v33 = vpop.permute.xlu1 %390 }
 0x1ea   :  { %v440_v31 = vmul.f32 %v1622_v41, %v391_v33 }
 0x1eb   :  { %v396_v35 = vpop.permute.xlu0 %395 }
 0x1ec   :  { %v452_v50 = vpack.c.bf16 %v440_v31, %v439_v48  ;;  %v441_v0 = vmul.f32 %v396_v35, %v1631_v52 }
 0x1ed   :  { %633 = vmatmul.mubr.bf16.gmra.mrb[4].mxu1 %v1574_v1  ;;  %v401_v51 = vpop.permute.xlu1 %400 }
 0x1ee   :  { %v442_v53 = vmul.f32 %v401_v51, %v1636_v57  ;;  %640 = vmatprep.mubr.bf16.mxu1 %v451_v47 }
 0x1ef   :  { %v406_v39 = vpop.permute.xlu0 %405 }
 0x1f0   :  { %v453_v42 = vpack.c.bf16 %v442_v53, %v441_v0  ;;  %v443_v56 = vmul.f32 %v1628_v49, %v406_v39 }
 0x1f1   :  { %v411_v54 = vpop.permute.xlu1 %410 }
 0x1f2   :  { %v444_v58 = vmul.f32 %v1634_v55, %v411_v54 }
 0x1f3   :  { %v416_v37 = vpop.permute.xlu0 %415 }
 0x1f4   :  { %v454_v59 = vpack.c.bf16 %v444_v58, %v443_v56  ;;  %v445_v1 = vmul.f32 %v416_v37, %v1643_v10 }
 0x1f5   :  { %641 = vmatmul.mubr.bf16.gmra.mrb[8].mxu1 %v1579_v2  ;;  %v421_v41 = vpop.permute.xlu1 %420  ;;  %v1438_v2 = vmov 0.0  }
 0x1f6   :  { %v446_v60 = vmul.f32 %v421_v41, %v1648_v14  ;;  %648 = vmatprep.mubr.bf16.mxu1 %v452_v50  ;;  %1170 = vmatprep.subr.bf16.mxu0 %v1438_v2 }
 0x1f7   :  { %v426_v52 = vpop.permute.xlu0 %425  ;;  %1186 = vmatprep.mubr.msk.bf16.mxu0 %vm1439_vm0, %v1438_v2 }
 0x1f8   :  { %v455_v57 = vpack.c.bf16 %v446_v60, %v445_v1  ;;  %v447_v62 = vmul.f32 %v1640_v4, %v426_v52 }
 0x1f9   :  { %v431_v61 = vpop.permute.xlu1 %430 }
 0x1fa   :  { %v448_v63 = vmul.f32 %v1646_v13, %v431_v61 }
 0x1fc   :  { %v456_v49 = vpack.c.bf16 %v448_v63, %v447_v62 }
 0x1fd   :  { %649 = vmatmul.mubr.bf16.gmra.mrb[12].mxu1 %v1582_v3  ;;  %v1681_v3 = vld [vmem:[%s1729_s4] ss:$0 sm:$0xff] }
 0x1fe   :  { %656 = vmatprep.mubr.bf16.mxu1 %v453_v42 }
 0x205   :  { %657 = vmatmul.mubr.bf16.gmra.mrb[16].mxu1 %v1587_v5 }
 0x206   :  { %664 = vmatprep.mubr.bf16.mxu1 %v454_v59 }
 0x20d   :  { %665 = vmatmul.mubr.bf16.gmra.mrb[20].mxu1 %v1590_v6 }
 0x20e   :  { %672 = vmatprep.mubr.bf16.mxu1 %v455_v57 }
 0x215   :  { %673 = vmatmul.mubr.bf16.gmra.mrb[24].mxu1 %v1593_v7 }
 0x216   :  { %680 = vmatprep.mubr.bf16.mxu1 %v456_v49 }
 0x21d   :  { %681 = vmatmul.mubr.bf16.gmra.mrb[28].mxu1 %v1597_v8 }
 0x2b8   :  { %v1059_v55 = vpop.f32.mrb[0].mxu1 }
 0x2b9   :  { %v1060_v5 = vpop.f32.mrb[1].mxu1 }
 0x2ba   :  { %v1061_v6 = vadd.f32 %v1060_v5, %v1059_v55  ;;  %v1062_v4 = vpop.f32.mrb[2].mxu1 }
 0x2bb   :  { %v1063_v9 = vpop.f32.mrb[3].mxu1 }
 0x2bc   :  { %v627_v7 = vadd.f32 %v1061_v6, %v1681_v3  ;;  %v1064_v10 = vadd.f32 %v1063_v9, %v1062_v4 }
 0x2be   :  { %v630_v8 = vadd.f32 %v1064_v10, %v1681_v3  ;;  %v689_v11 = vmax.f32 %v627_v7, 0.0 }
 0x2c0   :  { %v690_v12 = vmax.f32 %v630_v8, 0.0  ;;  %v1065_v13 = vpop.f32.mrb[4].mxu1 }
 0x2c1   :  { %v1066_v14 = vpop.f32.mrb[5].mxu1 }
 0x2c2   :  { %v1685_v15 = vpack.c.bf16 %v690_v12, %v689_v11  ;;  %v1067_v16 = vadd.f32 %v1066_v14, %v1065_v13  ;;  %v1068_v17 = vpop.f32.mrb[6].mxu1 }
 0x2c3   :  { %v1069_v18 = vpop.f32.mrb[7].mxu1 }
 0x2c4   :  { %v635_v19 = vadd.f32 %v1067_v16, %v1681_v3  ;;  %v1070_v20 = vadd.f32 %v1069_v18, %v1068_v17  ;;  %1171 = vmatpush3.bf16.msra.mxu0 %v1685_v15 }
 0x2c5   :  { %1172 = vmatprep.subr.bf16.mxu0 %v1438_v2 }
 0x2c6   :  { %v638_v21 = vadd.f32 %v1070_v20, %v1681_v3  ;;  %v691_v22 = vmax.f32 %v635_v19, 0.0 }
 0x2c8   :  { %v692_v23 = vmax.f32 %v638_v21, 0.0  ;;  %v1071_v24 = vpop.f32.mrb[8].mxu1 }
 0x2c9   :  { %v1072_v25 = vpop.f32.mrb[9].mxu1 }
 0x2ca   :  { %v706_v26 = vpack.c.bf16 %v692_v23, %v691_v22  ;;  %v1073_v27 = vadd.f32 %v1072_v25, %v1071_v24  ;;  %v1074_v28 = vpop.f32.mrb[10].mxu1 }
 0x2cb   :  { %v1075_v30 = vpop.f32.mrb[11].mxu1 }
 0x2cc   :  { %v643_v32 = vadd.f32 %v1073_v27, %v1681_v3  ;;  %v1076_v34 = vadd.f32 %v1075_v30, %v1074_v28  ;;  %1173 = vmatpush3.bf16.msra.mxu0 %v706_v26 }
 0x2cd   :  { %1174 = vmatprep.subr.bf16.mxu0 %v1438_v2 }
 0x2ce   :  { %v646_v36 = vadd.f32 %v1076_v34, %v1681_v3  ;;  %v693_v38 = vmax.f32 %v643_v32, 0.0  ;;  %v1237_v32 = vld [vmem:[#allocation5] sm:$0xff]   ;;  %v1238_v34 = vld [vmem:[#allocation10 + $0x40] sm:$0xff]  }
 0x2d0   :  { %v694_v40 = vmax.f32 %v646_v36, 0.0  ;;  %v1077_v43 = vpop.f32.mrb[12].mxu1  ;;  %v1239_v36 = vld [vmem:[#allocation10] sm:$0xff]  }
 0x2d1   :  { %v1078_v44 = vpop.f32.mrb[13].mxu1 }
 0x2d2   :  { %v707_v45 = vpack.c.bf16 %v694_v40, %v693_v38  ;;  %v1079_v46 = vadd.f32 %v1078_v44, %v1077_v43  ;;  %v1080_v29 = vpop.f32.mrb[14].mxu1  ;;  %v1240_v38 = vld [vmem:[#allocation10 + $0x48] sm:$0xff]   ;;  %v1242_v43 = vld [vmem:[#allocation10 + $0x50] sm:$0xff]  }
 0x2d3   :  { %v1081_v47 = vpop.f32.mrb[15].mxu1  ;;  %v1241_v40 = vld [vmem:[#allocation10 + $0x8] sm:$0xff]   ;;  %v1243_v44 = vld [vmem:[#allocation10 + $0x10] sm:$0xff]  }
 0x2d4   :  { %v651_v33 = vadd.f32 %v1079_v46, %v1681_v3  ;;  %v1082_v48 = vadd.f32 %v1081_v47, %v1080_v29  ;;  %1175 = vmatpush3.bf16.msra.mxu0 %v707_v45  ;;  %v1246_v45 = vld [vmem:[#allocation10 + $0x60] sm:$0xff]   ;;  %v1248_v29 = vld [vmem:[#allocation10 + $0x68] sm:$0xff]  }
 0x2d5   :  { %1176 = vmatprep.subr.bf16.mxu0 %v1438_v2  ;;  %v1247_v46 = vld [vmem:[#allocation10 + $0x20] sm:$0xff]   ;;  %v1249_v47 = vld [vmem:[#allocation10 + $0x28] sm:$0xff]  }
 0x2d6   :  { %v654_v31 = vadd.f32 %v1082_v48, %v1681_v3  ;;  %v695_v35 = vmax.f32 %v651_v33, 0.0  ;;  %v1250_v33 = vld [vmem:[#allocation10 + $0x70] sm:$0xff]  }
 0x2d8   :  { %v696_v50 = vmax.f32 %v654_v31, 0.0  ;;  %v1083_v51 = vpop.f32.mrb[16].mxu1 }
 0x2d9   :  { %v1084_v0 = vpop.f32.mrb[17].mxu1 }
 0x2da   :  { %v708_v53 = vpack.c.bf16 %v696_v50, %v695_v35  ;;  %v1085_v39 = vadd.f32 %v1084_v0, %v1083_v51  ;;  %v1086_v42 = vpop.f32.mrb[18].mxu1 }
 0x2db   :  { %v1087_v54 = vpop.f32.mrb[19].mxu1 }
 0x2dc   :  { %v659_v56 = vadd.f32 %v1085_v39, %v1681_v3  ;;  %v1088_v58 = vadd.f32 %v1087_v54, %v1086_v42  ;;  %1177 = vmatpush3.bf16.msra.mxu0 %v708_v53  ;;  %v1251_v53 = vld [vmem:[#allocation10 + $0x30] sm:$0xff]   ;;  %v1252_v54 = vld [vmem:[#allocation10 + $0x78] sm:$0xff]  }
 0x2dd   :  { %1178 = vmatprep.subr.bf16.mxu0 %v1438_v2 }
 0x2de   :  { %v662_v37 = vadd.f32 %v1088_v58, %v1681_v3  ;;  %v697_v59 = vmax.f32 %v659_v56, 0.0  ;;  %v1253_v56 = vld [vmem:[#allocation10 + $0x38] sm:$0xff]  }
 0x2e0   :  { %v698_v41 = vmax.f32 %v662_v37, 0.0  ;;  %v1089_v1 = vpop.f32.mrb[20].mxu1 }
 0x2e1   :  { %v1090_v60 = vpop.f32.mrb[21].mxu1 }
 0x2e2   :  { %v709_v52 = vpack.c.bf16 %v698_v41, %v697_v59  ;;  %v1091_v57 = vadd.f32 %v1090_v60, %v1089_v1  ;;  %v1092_v61 = vpop.f32.mrb[22].mxu1 }
 0x2e3   :  { %v1093_v62 = vpop.f32.mrb[23].mxu1 }
 0x2e4   :  { %v667_v63 = vadd.f32 %v1091_v57, %v1681_v3  ;;  %v1094_v49 = vadd.f32 %v1093_v62, %v1092_v61  ;;  %1179 = vmatpush3.bf16.msra.mxu0 %v709_v52  ;;  %v1010_v52 = vld [vmem:[%s1731_s6] ss:$0 sm:$0xff] }
 0x2e5   :  { %1180 = vmatprep.subr.bf16.mxu0 %v1438_v2 }
 0x2e6   :  { %v670_v55 = vadd.f32 %v1094_v49, %v1681_v3  ;;  %v699_v5 = vmax.f32 %v667_v63, 0.0 }
 0x2e8   :  { %v700_v6 = vmax.f32 %v670_v55, 0.0  ;;  %v1095_v4 = vpop.f32.mrb[24].mxu1 }
 0x2e9   :  { %v1096_v9 = vpop.f32.mrb[25].mxu1 }
 0x2ea   :  { %v710_v7 = vpack.c.bf16 %v700_v6, %v699_v5  ;;  %v1097_v10 = vadd.f32 %v1096_v9, %v1095_v4  ;;  %v1098_v8 = vpop.f32.mrb[26].mxu1 }
 0x2eb   :  { %v1099_v11 = vpop.f32.mrb[27].mxu1 }
 0x2ec   :  { %v675_v12 = vadd.f32 %v1097_v10, %v1681_v3  ;;  %v1100_v13 = vadd.f32 %v1099_v11, %v1098_v8  ;;  %1181 = vmatpush3.bf16.msra.mxu0 %v710_v7 }
 0x2ed   :  { %1182 = vmatprep.subr.bf16.mxu0 %v1438_v2 }
 0x2ee   :  { %v678_v14 = vadd.f32 %v1100_v13, %v1681_v3  ;;  %v701_v16 = vmax.f32 %v675_v12, 0.0 }
 0x2f0   :  { %v702_v17 = vmax.f32 %v678_v14, 0.0  ;;  %v1101_v18 = vpop.f32.mrb[28].mxu1 }
 0x2f1   :  { %v1102_v19 = vpop.f32.mrb[29].mxu1 }
 0x2f2   :  { %v711_v20 = vpack.c.bf16 %v702_v17, %v701_v16  ;;  %v1103_v21 = vadd.f32 %v1102_v19, %v1101_v18  ;;  %v1104_v22 = vpop.f32.mrb[30].mxu1 }
 0x2f3   :  { %v1105_v23 = vpop.f32.mrb[31].mxu1 }
 0x2f4   :  { %v683_v24 = vadd.f32 %v1103_v21, %v1681_v3  ;;  %v1106_v25 = vadd.f32 %v1105_v23, %v1104_v22  ;;  %1183 = vmatpush3.bf16.msra.mxu0 %v711_v20 }
 0x2f5   :  { %1184 = vmatprep.subr.bf16.mxu0 %v1438_v2  ;;  %v1244_v2 = vld [vmem:[#allocation10 + $0x58] sm:$0xff]  }
 0x2f6   :  { %v686_v26 = vadd.f32 %v1106_v25, %v1681_v3  ;;  %v703_v27 = vmax.f32 %v683_v24, 0.0  ;;  %v1245_v3 = vld [vmem:[#allocation10 + $0x18] sm:$0xff]  }
 0x2f8   :  { %v704_v28 = vmax.f32 %v686_v26, 0.0 }
 0x2fa   :  { %v712_v30 = vpack.c.bf16 %v704_v28, %v703_v27 }
 0x2fc   :  { %1185 = vmatpush3.bf16.msra.mxu0 %v712_v30 }
 0x2fd   :  { %1116 = vmatprep.subr.bf16.mxu0 %v1238_v34 }
 0x2ff   :  { %1187 = vmatmul.mubr.bf16.vlgmr.msra.gmra.mrb[16].mxu0 %v1237_v32 }
 0x300   :  { %1117 = vmatpush3.bf16.msra.mxu0 %v1239_v36 }
 0x301   :  { %1118 = vmatprep.subr.bf16.mxu0 %v1240_v38 }
 0x304   :  { %1119 = vmatpush3.bf16.msra.mxu0 %v1241_v40 }
 0x305   :  { %1120 = vmatprep.subr.bf16.mxu0 %v1242_v43 }
 0x308   :  { %1121 = vmatpush3.bf16.msra.mxu0 %v1243_v44 }
 0x309   :  { %1122 = vmatprep.subr.bf16.mxu0 %v1244_v2 }
 0x30c   :  { %1123 = vmatpush3.bf16.msra.mxu0 %v1245_v3 }
 0x30d   :  { %1124 = vmatprep.subr.bf16.mxu0 %v1246_v45 }
 0x310   :  { %1125 = vmatpush3.bf16.msra.mxu0 %v1247_v46 }
 0x311   :  { %1126 = vmatprep.subr.bf16.mxu0 %v1248_v29 }
 0x314   :  { %1127 = vmatpush3.bf16.msra.mxu0 %v1249_v47 }
 0x315   :  { %1128 = vmatprep.subr.bf16.mxu0 %v1250_v33 }
 0x318   :  { %1129 = vmatpush3.bf16.msra.mxu0 %v1251_v53 }
 0x319   :  { %1130 = vmatprep.subr.bf16.mxu0 %v1252_v54 }
 0x31c   :  { %1131 = vmatpush3.bf16.msra.mxu0 %v1253_v56 }
 0x3d2   :  { %v755_v48 = vpop.f32.mrb[16].mxu0 }
 0x3d3   :  { %v762_v31 = vmax.f32 %v755_v48, 1.0  ;;  %v1188_v35 = vpop.f32.mrb[17].mxu0 }
 0x3d4   :  { %v758_v50 = vpop.f32.mrb[18].mxu0 }
 0x3d5   :  { %1286 = vrcp.f32 %v762_v31  ;;  %v763_v51 = vmax.f32 %v758_v50, 1.0  ;;  %v1189_v0 = vpop.f32.mrb[19].mxu0 }
 0x3d7   :  { %1288 = vrcp.f32 %v763_v51 }
 0x3df   :  { %v1287_v39 = vpop.eup %1286 }
 0x3e0   :  { %768 = vperm.xlu0 %1203, %v1287_v39  }
 0x3e1   :  { %v1289_v42 = vpop.eup %1288 }
 0x3e2   :  { %773 = vperm.xlu1 %1204, %v1289_v42  }
 0x45f   :  { %v769_v58 = vpop.permute.xlu0 %768 }
 0x460   :  { %v776_v59 = vmul.f32 %v769_v58, %v755_v48 }
 0x461   :  { %v774_v37 = vpop.permute.xlu1 %773 }
 0x462   :  { %v777_v41 = vmul.f32 %v774_v37, %v758_v50 }
 0x464   :  { %v778_v1 = vpack.c.bf16 %v777_v41, %v776_v59 }
 0x466   :  { %946 = vmatprep.mubr.bf16.mxu0 %v778_v1 }
 0x467   :  { %947 = vmatmul.mubr.bf16.vlgmr.msra.gmra.mrb[20].mxu0 %v1685_v15 }
 0x53a   :  { %v1132_v60 = vpop.f32.mrb[20].mxu0 }
 0x53b   :  { %v1133_v57 = vpop.f32.mrb[21].mxu0 }
 0x53c   :  { %v1134_v61 = vadd.f32 %v1133_v57, %v1132_v60  ;;  %v1135_v62 = vpop.f32.mrb[22].mxu0 }
 0x53d   :  { %v1136_v63 = vpop.f32.mrb[23].mxu0 }
 0x53e   :  { %v949_v49 = vadd.f32 %v1134_v61, %v1010_v52  ;;  %v1137_v55 = vadd.f32 %v1136_v63, %v1135_v62 }
 0x540   :  { %955 = vst [vmem:[#allocation11] sm:$0xff] %v949_v49  ;;  %v952_v5 = vadd.f32 %v1137_v55, %v1010_v52 }
 0x542   :  { %956 = vst [vmem:[#allocation11 + $0x8] sm:$0xff] %v952_v5 }
 0x543   :  { %1411 = shalt.err (!%p1408_p2)
}
 0x544   :  { %s1412_s19 = scalar_lea.hbm %s1732_s7, 256 }
 0x545   :  { %p1413_p3 = scmp.ne.s32.totalorder %s1732_s7, %s1412_s19  ;;  %p1416_p4 = scmp.lt.u32.totalorder %s1412_s19, %s1732_s7 }
 0x547   :  { %p1418_p5 = pnand %p1416_p4, %p1413_p3 }
 0x549   :  { %1421 = shalt.err (!%p1418_p5)
}
 0x54a   :  { %s1441_s24 = smov 128   ;;  %s1442_s1 = smov 8  }
 0x54b   :  { %968 = dma.vmem_to_hbm [thread:$0]  %s963_s27, 256, %s1732_s7, [#allocation4], %s1441_s24, %s1441_s24, %s1442_s1  }
 0x54c   :  { %1428 = dma.done.wait [#allocation4], 256  }
 0x54d   :  { %1429 = vsyncadd [#allocation4], 4294967040 }
 0x54e   :  { %972 = vsyncpa [#allocation3], 1 }
 0x54f   :  { %973 = vsyncpa [#allocation6], 1 }
 0x550   :  { %974 = vsyncpa [#allocation9], 1 }
 0x551   :  { %975 = vsyncpa [#allocation4], 1 }

</bundles_post_ra>
